<compile_context>
chip_gen: v6e
topology: v6e:2x2x1
jax: 0.10.0
libtpu: 0.0.40
codegen_flags: <defaults>
</compile_context>

<pallas_src>
import functools

import jax
import jax.numpy as jnp
from jax.experimental import pallas as pl
from jax.experimental.pallas import tpu as pltpu


def _round_up(x: int, m: int) -> int:
    return ((x + m - 1) // m) * m


def _max_margin_kernel(xt_ref, out_ref, *, margin, inv_num_neg):
    # xt_ref: (num_scores, block_cols)  -- scores on sublanes, batch on lanes (dense)
    x = xt_ref[...].astype(jnp.float32)                    # (S, C)
    pos = x[0:1, :]                                        # (1, C) sublane row 0
    # relu(margin - pos + score) for every row; the pos-vs-pos row is masked below.
    t = jnp.maximum((margin - pos) + x, 0.0)               # (S, C), full-lane VPU work
    row = jax.lax.broadcasted_iota(jnp.int32, x.shape, 0)  # 2-D iota (TPU requirement)
    t = jnp.where(row > 0, t, 0.0)                         # drop row 0 (the positive)
    # mean over the K negatives: sublane reduce (XLU) + one folded multiply
    loss = jnp.sum(t, axis=0, keepdims=True) * inv_num_neg  # (1, C) lane-dense
    out_ref[...] = loss.astype(out_ref.dtype)


def max_margin_with_logits_negative_sampling_loss(logits, margin: float = 1.0,
                                                  block_cols=None):
    *batch_dims, num_scores = logits.shape
    assert num_scores >= 2, "need at least one positive and one negative score"
    num_neg = num_scores - 1

    b_total = 1
    for d in batch_dims:
        b_total *= int(d)

    x = logits.reshape(b_total, num_scores)
    # Transposed presentation: (1+K, B) so the batch axis is lane-dense in the kernel.
    # (For num_scores dividing 128 this transpose could be replaced by a free row-major
    #  reshape + in-kernel roll-based group reduce; the transposed form is generic.)
    xt = x.T                                                # (num_scores, b_total)

    itemsize = jnp.dtype(logits.dtype).itemsize
    s_pad = _round_up(num_scores, 8)

    if block_cols is None:
        # VMEM budget per grid step ~ double-buffered input (s_pad x C) + double-buffered
        # output ((1 -> 8 padded sublanes) x C), counted at 4 B/elem (f32 padding).
        # Keep under ~12 MiB so the 16 MiB default scoped VMEM on v5e is safe
        # (v6e/v7x default to 32 MiB scoped).
        vmem_budget = 12 * 1024 * 1024
        bytes_per_col = 2 * (s_pad + 8) * 4
        block_cols = (vmem_budget // bytes_per_col) // 128 * 128
        block_cols = min(block_cols, 64 * 1024)
    block_cols = max(128, _round_up(int(block_cols), 128))
    block_cols = min(block_cols, _round_up(b_total, 128))

    b_pad = _round_up(b_total, block_cols)
    if b_pad != b_total:
        xt = jnp.pad(xt, ((0, 0), (0, b_pad - b_total)))
    n_blocks = b_pad // block_cols

    kernel = functools.partial(
        _max_margin_kernel,
        margin=float(margin),
        inv_num_neg=1.0 / float(num_neg),
    )

    cost = pl.CostEstimate(
        flops=4 * b_total * num_scores,
        transcendentals=0,
        bytes_accessed=b_total * num_scores * itemsize + b_total * itemsize,
    )

    out = pl.pallas_call(
        kernel,
        out_shape=jax.ShapeDtypeStruct((1, b_pad), logits.dtype),
        grid_spec=pltpu.PrefetchScalarGridSpec(
            num_scalar_prefetch=0,
            grid=(n_blocks,),
            in_specs=[pl.BlockSpec((num_scores, block_cols), lambda i: (0, i))],
            out_specs=pl.BlockSpec((1, block_cols), lambda i: (0, i)),
        ),
        compiler_params=pltpu.CompilerParams(
            dimension_semantics=("parallel",)),
        cost_estimate=cost,
    )(xt)

    out = out[0, :b_total]
    return out.reshape(*batch_dims) if batch_dims else out.reshape(())


def _reference_loss(logits, margin=1.0):
    pos = logits[..., 0:1]
    neg = logits[..., 1:]
    return jnp.maximum(margin - pos + neg, 0.0).mean(axis=-1)


if __name__ == "__main__":
    key = jax.random.PRNGKey(0)
    # (..., 1+K) with batch dims (2, 4) and K = 7 negatives -> logits (2, 4, 8)
    logits = jax.random.normal(key, (2, 4, 8), dtype=jnp.float32)
    margin = 1.0

    loss = max_margin_with_logits_negative_sampling_loss(logits, margin=margin)
    loss = jax.block_until_ready(loss)

    ref = _reference_loss(logits, margin)
    assert loss.shape == ref.shape == (2, 4), (loss.shape, ref.shape)
    assert jnp.allclose(loss, ref, atol=1e-6, rtol=1e-6), (loss, ref)

    print("KERNEL_OK")
</pallas_src>

<mosaic_0001>
module attributes {stable_mosaic.version = 11 : i64} {
  func.func @_max_margin_kernel(%arg0: i32, %arg1: memref<8x128xf32, #tpu.memory_space<vmem>>, %arg2: memref<1x128xf32, #tpu.memory_space<vmem>>) attributes {dimension_semantics = [#tpu.dimension_semantics<parallel>], iteration_bounds = array<i64: 1>, scalar_prefetch = 0 : i64, scratch_operands = 0 : i64, tpu.core_type = #tpu.core_type<tc>, window_params = [{transform_indices = @transform_0, window_bounds = array<i64: 8, 128>}, {transform_indices = @transform_1, window_bounds = array<i64: 1, 128>}]} {
    %c0 = arith.constant 0 : index
    %c0_0 = arith.constant 0 : index
    %0 = vector.load %arg1[%c0, %c0_0] : memref<8x128xf32, #tpu.memory_space<vmem>>, vector<8x128xf32>
    %1 = vector.extract_strided_slice %0 {offsets = [0, 0], sizes = [1, 128], strides = [1, 1]} : vector<8x128xf32> to vector<1x128xf32>
    %cst = arith.constant 1.000000e+00 : f32
    %2 = vector.broadcast %cst : f32 to vector<1x128xf32>
    %3 = arith.subf %2, %1 : vector<1x128xf32>
    %4 = vector.broadcast %3 : vector<1x128xf32> to vector<8x128xf32>
    %5 = arith.addf %4, %0 : vector<8x128xf32>
    %cst_1 = arith.constant 0.000000e+00 : f32
    %6 = vector.broadcast %cst_1 : f32 to vector<8x128xf32>
    %7 = arith.maximumf %5, %6 : vector<8x128xf32>
    %8 = tpu.iota {dimensions = array<i32: 0>} : vector<8x128xi32>
    %c0_i32 = arith.constant 0 : i32
    %9 = vector.broadcast %c0_i32 : i32 to vector<8x128xi32>
    %10 = arith.cmpi sgt, %8, %9 : vector<8x128xi32>
    %cst_2 = arith.constant 0.000000e+00 : f32
    %11 = vector.broadcast %cst_2 : f32 to vector<8x128xf32>
    %12 = arith.select %10, %7, %11 : vector<8x128xi1>, vector<8x128xf32>
    %cst_3 = arith.constant dense<0.000000e+00> : vector<128xf32>
    %13 = vector.multi_reduction <add>, %12, %cst_3 [0] : vector<8x128xf32> to vector<128xf32>
    %14 = vector.shape_cast %13 : vector<128xf32> to vector<1x128xf32>
    %cst_4 = arith.constant 0.142857149 : f32
    %15 = vector.broadcast %cst_4 : f32 to vector<1x128xf32>
    %16 = arith.mulf %14, %15 : vector<1x128xf32>
    %c0_5 = arith.constant 0 : index
    %c0_6 = arith.constant 0 : index
    %17 = vector.load %arg2[%c0_5, %c0_6] : memref<1x128xf32, #tpu.memory_space<vmem>>, vector<1x128xf32>
    tpu.vector_store %arg2[%c0_5, %c0_6], %16 {strides = array<i32>} : memref<1x128xf32, #tpu.memory_space<vmem>>, vector<1x128xf32>,
    return
  }
  func.func @transform_0(%arg0: i32) -> (i32, i32) {
    %c0_i32 = arith.constant 0 : i32
    %c0_i32_0 = arith.constant 0 : i32
    return %c0_i32, %arg0 : i32, i32
  }
  func.func @transform_1(%arg0: i32) -> (i32, i32) {
    %c0_i32 = arith.constant 0 : i32
    %c0_i32_0 = arith.constant 0 : i32
    return %c0_i32, %arg0 : i32, i32
  }
}

</mosaic_0001>

<bundles_post_ra>
// kernel: tpu_custom_call.1
= control target key start
LH: loop header
LB: loop body
LE: loop exit
PB: predicated region body
PF: predicated region fallthrough
CT: control target
= control target key end

     0   :  { %6 = vsyncpa [#allocation3], 0  ;;  %s120_s0 = inlined_call_operand.hbm [shape: f32[8,128], index: 0, kind: input, shape index: {}]   ;;  %s121_s1 = inlined_call_operand.hbm [shape: f32[1,128], index: 1, kind: output, shape index: {}]  }
   0x1   :  { %7 = vsyncpa [#allocation4], 0  ;;  %s102_s6 = smov [#allocation2]  }
   0x2   :  { %s14_s7 = sshll.u32 %s102_s6, 4  ;;  %s15_s7 = int_to_ptr.vmem [resolvable:$true] %s14_s7 }
   0x3   :  { %s66_s8 = scalar_lea.vmem %s15_s7, 128  ;;  %p71_p1 = scmp.lt.s32.totalorder %s15_s7, %s15_s7 }
   0x4   :  { %p67_p0 = scmp.ne.s32.totalorder %s15_s7, %s66_s8  ;;  %p72_p2 = scmp.lt.s32.totalorder %s66_s8, %s66_s8 }
   0x6   :  { %p73_p3 = por %p72_p2, %p71_p1 }
   0x8   :  { %p74_p4 = pnand %p73_p3, %p67_p0 }
   0xa   :  { %77 = shalt.err (!%p74_p4)
}
   0xb   :  { %17 = dma.hbm_to_vmem [thread:$0]  %s120_s0, 128, %s15_s7, [#allocation3]  }
   0xc   :  { %98 = dma.done.wait [#allocation3], 128  }
   0xd   :  { %99 = vsyncadd [#allocation3], 4294967168  ;;  %v23_v0 = vlaneseq  ;;  %v21_v3 = vld [vmem:[#allocation2] sm:$0xff]  ;;  %s103_s11 = smov [#allocation5]  }
   0xe   :  { %v22_v4 = vsub.f32 1.0, %v21_v3  ;;  %s47_s12 = sshll.u32 %s103_s11, 4  ;;  %s48_s12 = int_to_ptr.vmem [resolvable:$true] %s47_s12 }
   0xf   :  { %v24_v1 = vshrl.u32 %v23_v0, 7  ;;  %s78_s0 = scalar_lea.vmem %s48_s12, 16  ;;  %s82_s13 = scalar_lea.vmem %s48_s12, 32 }
  0x10   :  { %p79_p5 = scmp.ne.s32.totalorder %s48_s12, %s78_s0  ;;  %p83_p6 = scmp.lt.s32.totalorder %s48_s12, %s48_s12 }
  0x11   :  { %v25_v2 = vsub.s32 0, %v24_v1  ;;  %vm31_vm0 = vcmp.gt.s32.totalorder %v24_v1, 0  ;;  %p84_p7 = scmp.lt.s32.totalorder %s82_s13, %s78_s0 }
  0x13   :  { %v26_v5 = vrot.slane %v22_v4, %v25_v2  ;;  %p85_p8 = por %p84_p7, %p83_p6 }
  0x15   :  { %v27_v6 = vadd.f32 %v26_v5, %v21_v3  ;;  %p86_p9 = pnand %p85_p8, %p79_p5 }
  0x17   :  { %v28_v7 = vmax.f32 %v27_v6, 0.0 }
  0x19   :  { %v32_v8 = vsel %vm31_vm0, %v28_v7, 0.0 }
  0x1a   :  { %v33_v9 = vrot.slane %v32_v8, 4 }
  0x1c   :  { %v34_v10 = vadd.f32 %v33_v9, %v32_v8 }
  0x1e   :  { %v35_v11 = vrot.slane %v34_v10, 2 }
  0x20   :  { %v36_v12 = vadd.f32 %v35_v11, %v34_v10 }
  0x22   :  { %v37_v13 = vrot.slane %v36_v12, 1 }
  0x24   :  { %v38_v14 = vadd.f32 %v37_v13, %v36_v12 }
  0x26   :  { %v39_v15 = vmul.f32 0.14285715, %v38_v14 }
  0x28   :  { %40 = vst [vmem:[#allocation5] sm:$0x1] %v39_v15 }
  0x29   :  { %89 = shalt.err (!%p86_p9)
}
  0x2a   :  { %50 = dma.vmem_to_hbm [thread:$0]  %s48_s12, 16, %s121_s1, [#allocation4]  }
  0x2b   :  { %100 = dma.done.wait [#allocation4], 16  }
  0x2c   :  { %101 = vsyncadd [#allocation4], 4294967280 }
  0x2d   :  { %54 = vsyncpa [#allocation3], 1 }
  0x2e   :  { %55 = vsyncpa [#allocation4], 1 }

</bundles_post_ra>
